<compile_context>
chip_gen: v7x
topology: tpu7x:2x2x1
jax: 0.10.0
libtpu: 0.0.40
codegen_flags: <defaults>
</compile_context>

<pallas_src>
import functools

import jax
import jax.numpy as jnp
from jax.experimental import pallas as pl
from jax.experimental.pallas import tpu as pltpu

Cin = 16
Cout = 4
KH, KW = 3, 3


def _conv_logsoftmax_kernel(x_ref, w_ref, b_ref, out_ref, *, img_w):
    # x_ref  : [Cin, L]   channel-major; L = (#images in block) * H * W, pixels
    #                     (and images) concatenated on the 128-wide lane axis.
    # w_ref  : [KH*KW*Cout, Cin]  tap-major rows: row (t*Cout + co) = weight[co, :, t].
    # b_ref  : [Cout, 1]
    # out_ref: [Cout, L]  log_softmax(conv(x) + b) over the channel (sublane) axis.
    x = x_ref[...]
    L = x.shape[-1]

    # One MXU matmul for all 9 taps: [36, Cin] @ [Cin, L] -> [36, L], f32 accumulate.
    y = jnp.dot(w_ref[...], x, preferred_element_type=jnp.float32)

    # Apply each tap's flat spatial shift to its [Cout, L] output slab via a lane
    # roll and sum.  Wrapped lanes only ever land on cropped border pixels.
    acc = y[0:Cout, :]                                   # tap (0,0): shift 0
    for idx in range(1, KH * KW):
        di, dj = divmod(idx, KW)
        s = di * img_w + dj                              # flat shift of this tap
        acc = acc + pltpu.roll(y[idx * Cout:(idx + 1) * Cout, :],
                               shift=(-s) % L, axis=1)
    acc = acc + b_ref[...]                               # [Cout, 1] broadcasts over lanes

    # log_softmax over the channel (sublane) axis -- 4 rows, lane-dense, all f32.
    m = jnp.max(acc, axis=0, keepdims=True)
    z = acc - m
    lse = jnp.log(jnp.sum(jnp.exp(z), axis=0, keepdims=True))
    out_ref[...] = (z - lse).astype(out_ref.dtype)


def prepare_params(weight, bias):
    """One-time repack (hoisted out of the forward): [Cout,Cin,3,3]->[36,Cin], bias->[Cout,1]."""
    w36 = weight.transpose(2, 3, 0, 1).reshape(KH * KW * Cout, Cin)  # row (t*Cout+co)
    b2 = bias.reshape(Cout, 1).astype(jnp.float32)
    return w36, b2


def _choose_images_per_step(n, hw):
    """How many images (Nb) to pack onto the lane axis per grid step."""
    if n <= 2 or hw % 128 != 0:
        return 1                        # per-image path; no host transposes needed
    # A few thousand lanes per step amortizes the ~0.35us grid-step overhead while the
    # double-buffered input block stays tiny vs. VMEM (even v7x's 64 MiB):
    #   2 * Cin * Nb*HW * 4B ~= 0.5 MiB at 4096 lanes.
    target_lanes = 4096
    nb = max(1, min(n // 2, max(1, target_lanes // hw)))  # >= 2 grid steps (v7x dual-TC)
    while n % nb:                                         # Nb must divide N
        nb -= 1
    return nb


@functools.partial(jax.jit, static_argnames=("use_bf16",))
def net_forward(x, w36, b2, *, use_bf16=False):
    """x: [N, Cin, H, W]; w36/b2 from prepare_params() -> [N, Cout, H-2, W-2] f32."""
    N, C, H, W = x.shape
    assert C == Cin and H >= KH and W >= KW   # stride-1 VALID 3x3 contract (see kernel doc)
    Ho, Wo = H - KH + 1, W - KW + 1
    HW = H * W

    in_dtype = jnp.bfloat16 if use_bf16 else x.dtype
    xq = x.astype(in_dtype)
    wq = w36.astype(in_dtype)                 # bias stays f32; acc/softmax stay f32
    kernel = functools.partial(_conv_logsoftmax_kernel, img_w=W)
    nb = _choose_images_per_step(N, HW)

    if nb == 1:
        # Per-image path: free reshape of NCHW, one image per grid step, output written
        # straight into [N, Cout, HW] (no host-side transposes at all).
        out3 = pl.pallas_call(
            kernel,
            out_shape=jax.ShapeDtypeStruct((N, Cout, HW), jnp.float32),
            grid=(N,),
            in_specs=[
                pl.BlockSpec((None, Cin, HW), lambda n: (n, 0, 0)),       # one image
                pl.BlockSpec((KH * KW * Cout, Cin), lambda n: (0, 0)),    # resident weights
                pl.BlockSpec((Cout, 1), lambda n: (0, 0)),                # resident bias
            ],
            out_specs=pl.BlockSpec((None, Cout, HW), lambda n: (n, 0, 0)),
            compiler_params=pltpu.CompilerParams(
                dimension_semantics=("parallel",)),                       # batch across TCs
        )(xq.reshape(N, Cin, HW), wq, b2)
        out_padded = out3.reshape(N, Cout, H, W)                          # free reshape
    else:
        # Lane-batched path: Nb images concatenated channel-major on the lane axis
        # per grid step; cross-image roll wrap only hits cropped border pixels.
        x_cm = xq.transpose(1, 0, 2, 3).reshape(Cin, N * HW)
        out_cm = pl.pallas_call(
            kernel,
            out_shape=jax.ShapeDtypeStruct((Cout, N * HW), jnp.float32),
            grid=(N // nb,),
            in_specs=[
                pl.BlockSpec((Cin, nb * HW), lambda i: (0, i)),
                pl.BlockSpec((KH * KW * Cout, Cin), lambda i: (0, 0)),
                pl.BlockSpec((Cout, 1), lambda i: (0, 0)),
            ],
            out_specs=pl.BlockSpec((Cout, nb * HW), lambda i: (0, i)),
            compiler_params=pltpu.CompilerParams(
                dimension_semantics=("parallel",)),
        )(x_cm, wq, b2)
        out_padded = out_cm.reshape(Cout, N, H, W).transpose(1, 0, 2, 3)  # tiny post-op

    # Crop the 2-pixel VALID border only at the final read-out.
    return out_padded[:, :, :Ho, :Wo]


def _reference(x, weight, bias):
    # Pure-JAX reference: conv (NCHW, OIHW, VALID) + log_softmax over channel dim.
    y = jax.lax.conv_general_dilated(
        x, weight, window_strides=(1, 1), padding="VALID",
        dimension_numbers=("NCHW", "OIHW", "NCHW"))
    y = y + bias.reshape(1, Cout, 1, 1)
    return jax.nn.log_softmax(y, axis=1)


if __name__ == "__main__":
    key = jax.random.PRNGKey(0)
    kx, kw, kb = jax.random.split(key, 3)

    N, H, W = 2, 16, 16
    x = jax.random.normal(kx, (N, Cin, H, W), dtype=jnp.float32)

    # Deterministic PyTorch-like uniform init for Conv2d.
    fan_in = Cin * KH * KW
    bound = 1.0 / jnp.sqrt(fan_in)
    weight = jax.random.uniform(kw, (Cout, Cin, KH, KW), jnp.float32, -bound, bound)
    bias = jax.random.uniform(kb, (Cout,), jnp.float32, -bound, bound)

    w36, b2 = prepare_params(weight, bias)        # hoisted one-time repack (perf item 6)

    # Per-image path: N=2 -> two grid steps, one per v7x TensorCore.
    out = jax.block_until_ready(net_forward(x, w36, b2))
    ref = _reference(x, weight, bias)
    assert out.shape == (N, Cout, H - 2, W - 2)
    assert jnp.allclose(out, ref, atol=2e-5, rtol=2e-5), "mismatch vs reference (N=2)"

    # Lane-batched path: N=8 -> Nb=4 images per grid step, 2 grid steps.
    x8 = jax.random.normal(jax.random.PRNGKey(1), (8, Cin, H, W), dtype=jnp.float32)
    out8 = jax.block_until_ready(net_forward(x8, w36, b2))
    ref8 = _reference(x8, weight, bias)
    assert out8.shape == (8, Cout, H - 2, W - 2)
    assert jnp.allclose(out8, ref8, atol=2e-5, rtol=2e-5), "mismatch vs reference (N=8)"

    print("KERNEL_OK")
</pallas_src>

<mosaic_0001>
module attributes {stable_mosaic.version = 11 : i64} {
  func.func @_conv_logsoftmax_kernel(%arg0: i32, %arg1: memref<1x16x256xf32, #tpu.memory_space<vmem>>, %arg2: memref<36x16xf32, #tpu.memory_space<vmem>>, %arg3: memref<4x1xf32, #tpu.memory_space<vmem>>, %arg4: memref<1x4x256xf32, #tpu.memory_space<vmem>>) attributes {dimension_semantics = [#tpu.dimension_semantics<parallel>], iteration_bounds = array<i64: 2>, scalar_prefetch = 0 : i64, scratch_operands = 0 : i64, tpu.core_type = #tpu.core_type<tc>, window_params = [{transform_indices = @transform_0, window_bounds = array<i64: 1, 16, 256>}, {pipeline_mode = #tpu.pipeline_mode<synchronous>, transform_indices = @transform_1, window_bounds = array<i64: 36, 16>}, {pipeline_mode = #tpu.pipeline_mode<synchronous>, transform_indices = @transform_2, window_bounds = array<i64: 4, 1>}, {transform_indices = @transform_3, window_bounds = array<i64: 1, 4, 256>}]} {
    %c0 = arith.constant 0 : index
    %c0_0 = arith.constant 0 : index
    %c0_1 = arith.constant 0 : index
    %0 = vector.load %arg1[%c0, %c0_0, %c0_1] : memref<1x16x256xf32, #tpu.memory_space<vmem>>, vector<1x16x256xf32>
    %1 = vector.shape_cast %0 : vector<1x16x256xf32> to vector<16x256xf32>
    %c0_2 = arith.constant 0 : index
    %c0_3 = arith.constant 0 : index
    %2 = vector.load %arg2[%c0_2, %c0_3] : memref<36x16xf32, #tpu.memory_space<vmem>>, vector<36x16xf32>
    %cst = arith.constant dense<0.000000e+00> : vector<36x256xf32>
    %3 = tpu.matmul %2, %1, %cst {dimension_numbers = #tpu.dot_dimension_numbers<[1], [0], [0], [1], [0, 0, 1, 1], [], []>} : vector<36x16xf32>, vector<16x256xf32>, vector<36x256xf32> -> vector<36x256xf32>
    %4 = vector.extract_strided_slice %3 {offsets = [0, 0], sizes = [4, 256], strides = [1, 1]} : vector<36x256xf32> to vector<4x256xf32>
    %5 = vector.extract_strided_slice %3 {offsets = [4, 0], sizes = [4, 256], strides = [1, 1]} : vector<36x256xf32> to vector<4x256xf32>
    %c255_i32 = arith.constant 255 : i32
    %6 = tpu.dynamic_rotate %5 by %c255_i32 dim 1 : vector<4x256xf32>, i32 -> vector<4x256xf32>
    %7 = arith.addf %4, %6 : vector<4x256xf32>
    %8 = vector.extract_strided_slice %3 {offsets = [8, 0], sizes = [4, 256], strides = [1, 1]} : vector<36x256xf32> to vector<4x256xf32>
    %c254_i32 = arith.constant 254 : i32
    %9 = tpu.dynamic_rotate %8 by %c254_i32 dim 1 : vector<4x256xf32>, i32 -> vector<4x256xf32>
    %10 = arith.addf %7, %9 : vector<4x256xf32>
    %11 = vector.extract_strided_slice %3 {offsets = [12, 0], sizes = [4, 256], strides = [1, 1]} : vector<36x256xf32> to vector<4x256xf32>
    %c240_i32 = arith.constant 240 : i32
    %12 = tpu.dynamic_rotate %11 by %c240_i32 dim 1 : vector<4x256xf32>, i32 -> vector<4x256xf32>
    %13 = arith.addf %10, %12 : vector<4x256xf32>
    %14 = vector.extract_strided_slice %3 {offsets = [16, 0], sizes = [4, 256], strides = [1, 1]} : vector<36x256xf32> to vector<4x256xf32>
    %c239_i32 = arith.constant 239 : i32
    %15 = tpu.dynamic_rotate %14 by %c239_i32 dim 1 : vector<4x256xf32>, i32 -> vector<4x256xf32>
    %16 = arith.addf %13, %15 : vector<4x256xf32>
    %17 = vector.extract_strided_slice %3 {offsets = [20, 0], sizes = [4, 256], strides = [1, 1]} : vector<36x256xf32> to vector<4x256xf32>
    %c238_i32 = arith.constant 238 : i32
    %18 = tpu.dynamic_rotate %17 by %c238_i32 dim 1 : vector<4x256xf32>, i32 -> vector<4x256xf32>
    %19 = arith.addf %16, %18 : vector<4x256xf32>
    %20 = vector.extract_strided_slice %3 {offsets = [24, 0], sizes = [4, 256], strides = [1, 1]} : vector<36x256xf32> to vector<4x256xf32>
    %c224_i32 = arith.constant 224 : i32
    %21 = tpu.dynamic_rotate %20 by %c224_i32 dim 1 : vector<4x256xf32>, i32 -> vector<4x256xf32>
    %22 = arith.addf %19, %21 : vector<4x256xf32>
    %23 = vector.extract_strided_slice %3 {offsets = [28, 0], sizes = [4, 256], strides = [1, 1]} : vector<36x256xf32> to vector<4x256xf32>
    %c223_i32 = arith.constant 223 : i32
    %24 = tpu.dynamic_rotate %23 by %c223_i32 dim 1 : vector<4x256xf32>, i32 -> vector<4x256xf32>
    %25 = arith.addf %22, %24 : vector<4x256xf32>
    %26 = vector.extract_strided_slice %3 {offsets = [32, 0], sizes = [4, 256], strides = [1, 1]} : vector<36x256xf32> to vector<4x256xf32>
    %c222_i32 = arith.constant 222 : i32
    %27 = tpu.dynamic_rotate %26 by %c222_i32 dim 1 : vector<4x256xf32>, i32 -> vector<4x256xf32>
    %28 = arith.addf %25, %27 : vector<4x256xf32>
    %c0_4 = arith.constant 0 : index
    %c0_5 = arith.constant 0 : index
    %29 = vector.load %arg3[%c0_4, %c0_5] : memref<4x1xf32, #tpu.memory_space<vmem>>, vector<4x1xf32>
    %30 = vector.broadcast %29 : vector<4x1xf32> to vector<4x256xf32>
    %31 = arith.addf %28, %30 : vector<4x256xf32>
    %cst_6 = arith.constant dense<0xFF800000> : vector<256xf32>
    %32 = vector.multi_reduction <maximumf>, %31, %cst_6 [0] : vector<4x256xf32> to vector<256xf32>
    %33 = vector.shape_cast %32 : vector<256xf32> to vector<1x256xf32>
    %34 = vector.broadcast %33 : vector<1x256xf32> to vector<4x256xf32>
    %35 = arith.subf %31, %34 : vector<4x256xf32>
    %36 = math.exp %35 : vector<4x256xf32>
    %cst_7 = arith.constant dense<0.000000e+00> : vector<256xf32>
    %37 = vector.multi_reduction <add>, %36, %cst_7 [0] : vector<4x256xf32> to vector<256xf32>
    %38 = vector.shape_cast %37 : vector<256xf32> to vector<1x256xf32>
    %39 = math.log %38 : vector<1x256xf32>
    %40 = vector.broadcast %39 : vector<1x256xf32> to vector<4x256xf32>
    %41 = arith.subf %35, %40 : vector<4x256xf32>
    %c0_8 = arith.constant 0 : index
    %c0_9 = arith.constant 0 : index
    %c0_10 = arith.constant 0 : index
    %42 = vector.load %arg4[%c0_8, %c0_9, %c0_10] : memref<1x4x256xf32, #tpu.memory_space<vmem>>, vector<1x4x256xf32>
    %43 = vector.shape_cast %42 : vector<1x4x256xf32> to vector<4x256xf32>
    %44 = vector.shape_cast %41 : vector<4x256xf32> to vector<1x4x256xf32>
    tpu.vector_store %arg4[%c0_8, %c0_9, %c0_10], %44 {strides = array<i32>} : memref<1x4x256xf32, #tpu.memory_space<vmem>>, vector<1x4x256xf32>,
    return
  }
  func.func @transform_0(%arg0: i32) -> (i32, i32, i32) {
    %c0_i32 = arith.constant 0 : i32
    %c0_i32_0 = arith.constant 0 : i32
    %c0_i32_1 = arith.constant 0 : i32
    return %arg0, %c0_i32, %c0_i32_0 : i32, i32, i32
  }
  func.func @transform_1(%arg0: i32) -> (i32, i32) {
    %c0_i32 = arith.constant 0 : i32
    %c0_i32_0 = arith.constant 0 : i32
    %c0_i32_1 = arith.constant 0 : i32
    return %c0_i32, %c0_i32_0 : i32, i32
  }
  func.func @transform_2(%arg0: i32) -> (i32, i32) {
    %c0_i32 = arith.constant 0 : i32
    %c0_i32_0 = arith.constant 0 : i32
    %c0_i32_1 = arith.constant 0 : i32
    return %c0_i32, %c0_i32_0 : i32, i32
  }
  func.func @transform_3(%arg0: i32) -> (i32, i32, i32) {
    %c0_i32 = arith.constant 0 : i32
    %c0_i32_0 = arith.constant 0 : i32
    %c0_i32_1 = arith.constant 0 : i32
    return %arg0, %c0_i32, %c0_i32_0 : i32, i32, i32
  }
}

</mosaic_0001>

<bundles_post_ra>
// kernel: net_forward.1
= control target key start
LH: loop header
LB: loop body
LE: loop exit
PB: predicated region body
PF: predicated region fallthrough
CT: control target
= control target key end

     0   :  { %s587_s12 = smov 0   ;;  %s630_s0 = inlined_call_operand.vmem [shape: f32[2,16,256], index: 0, kind: input, shape index: {}]   ;;  %s631_s1 = inlined_call_operand.vmem [shape: f32[36,16], index: 1, kind: input, shape index: {}]   ;;  %s632_s2 = inlined_call_operand.vmem [shape: f32[4,1], index: 2, kind: input, shape index: {}]   ;;  %s633_s3 = inlined_call_operand.vmem [shape: f32[2,4,256], index: 3, kind: output, shape index: {}]  }
   0x1 LB: > { %s498_s13 = sadd.s32 4294967295, %s555_s12   ;;  %p502_p0 = scmp.ge.s32.totalorder %s555_s12, 1  ;;  %s555_s12 = sphi %s587_s12, %s13_s12  }
   0x2   : > { %p137_p1 = scmp.lt.s32.totalorder %s555_s12, 3 }
   0x4   : > { %p138_p2 = pnand %p502_p0, %p137_p1 }
   0x5   : > { %p161_p3 = scmp.lt.s32.totalorder (!%p138_p2), %s498_s13, 1  ;;  %v557_v0 = vmov (!%p138_p2), 0.0   ;;  %v178_v7 = vld [vmem:[%s631_s1 + $0x18] sm:$0xff] (!%p138_p2)  ;;  %vm180_vm0 = vcmask (!%p138_p2), 130048   ;;  %v175_v8 = vld [vmem:[%s631_s1] sm:$0xff] (!%p138_p2)  ;;  %v176_v9 = vld [vmem:[%s631_s1 + $0x8] sm:$0xff] (!%p138_p2)  ;;  %v301_v36 = vlaneseq (!%p138_p2) }
   0x6   : > { %141 = sbr.rel (%p138_p2) target bundleno = 456 (0x1c8), region = 32  ;;  %278 = vmatprep.mubr.f32.mxu1 (!%p138_p2), %v557_v0  ;;  %260 = vmatprep.mubr.f32.mxu0 (!%p138_p2), %v557_v0  ;;  %v179_v10 = vld [vmem:[%s631_s1 + $0x20] sm:$0xf] (!%p138_p2)  ;;  %v177_v11 = vld [vmem:[%s631_s1 + $0x10] sm:$0xff] (!%p138_p2)  ;;  %v558_v12 = vmov (!%p138_p2), 0   ;;  %s559_s28 = smov (!%p138_p2), 96  }
   0x7   : > { %540 = vset.pattern.permute.xlu0 (!%p138_p2), %v558_v12  ;;  %s560_s29 = smov (!%p138_p2), 127   ;;  %s561_s30 = smov (!%p138_p2), 126   ;;  %v389_v29 = vld [vmem:[%s632_s2] sm:$0xf] (!%p138_p2)  ;;  %v302_v39 = vand.u32 (!%p138_p2), 127, %v301_v36  ;;  %vm397_vm9 = vcmask (!%p138_p2), 1043456  }
   0x8   : > { %s562_s4 = smov (!%p138_p2), 112   ;;  %s563_s5 = smov (!%p138_p2), 111  }
   0x9   : > { %s564_s6 = smov (!%p138_p2), 110   ;;  %s565_s7 = smov (!%p138_p2), 95   ;;  %vm303_vm1 = vcmp.lt.s32.totalorder (!%p138_p2), %v302_v39, 127  ;;  %vm312_vm2 = vcmp.lt.s32.totalorder (!%p138_p2), %v302_v39, 126  ;;  %vm327_vm3 = vcmp.lt.s32.totalorder (!%p138_p2), %v302_v39, 112  ;;  %vm336_vm4 = vcmp.lt.s32.totalorder (!%p138_p2), %v302_v39, 111 }
   0xa   : > { %s566_s10 = smov (!%p138_p2), 94   ;;  %vm351_vm5 = vcmp.lt.s32.totalorder (!%p138_p2), %v302_v39, 110  ;;  %vm360_vm6 = vcmp.lt.s32.totalorder (!%p138_p2), %v302_v39, 96  ;;  %vm375_vm7 = vcmp.lt.s32.totalorder (!%p138_p2), %v302_v39, 95  ;;  %vm384_vm8 = vcmp.lt.s32.totalorder (!%p138_p2), %v302_v39, 94 }
   0xd   : > { %s635_s13 = smov (!%p161_p3, %s498_s13), 1 }
   0xe   : > { %s514_s14 = sshll.u32 %s635_s13, 5  ;;  %s515_s11 = sshll.u32 %s635_s13, 3 }
   0xf   : > { %s165_s17 = scalar_lea.vmem %s630_s0, %s514_s14  ;;  %s170_s16 = scalar_lea.vmem %s633_s3, %s515_s11 }
  0x10   : > { %v172_v1 = vld [vmem:[%s165_s17 + $0x8] sm:$0xff]  ;;  %v174_v2 = vld [vmem:[%s165_s17 + $0x18] sm:$0xff]  ;;  %v171_v3 = vld [vmem:[%s165_s17] sm:$0xff] }
  0x11   : > { %v516_v4 = vpack.c.bf16 %v174_v2, %v172_v1  ;;  %v173_v5 = vld [vmem:[%s165_s17 + $0x10] sm:$0xff] }
  0x12   : > { %v518_v6 = vpack.c.bf16 %v173_v5, %v171_v3 }
  0x13   : > { %520 = vmatprep.subr.bf16.mxu1 %v516_v4  ;;  %517 = vmatprep.subr.bf16.mxu0 %v516_v4 }
  0x14   : > { %521 = vmatpush1.bf16.msra.mxu1 %v518_v6  ;;  %519 = vmatpush1.bf16.msra.mxu0 %v518_v6 }
  0x17   : > { %510 = vmatmul.mubr.msk.f32.vlgmr.msra.gmra.mrb[0].mxu1 %vm180_vm0, %v178_v7  ;;  %507 = vmatmul.mubr.msk.f32.vlgmr.msra.gmra.mrb[0].mxu0 %vm180_vm0, %v175_v8 }
  0x18   : > { %266 = vmatprep.mubr.f32.mxu0 %v557_v0  ;;  %284 = vmatprep.mubr.f32.mxu1 %v557_v0 }
  0x1b   : > { %508 = vmatmul.mubr.msk.f32.gmra.mrb[2].mxu0 %vm180_vm0, %v176_v9  ;;  %511 = vmatmul.mubr.msk.f32.gmra.mrb[2].mxu1 %vm180_vm0, %v179_v10 }
  0x1c   : > { %272 = vmatprep.mubr.f32.mxu0 %v557_v0 }
  0x1f   : > { %509 = vmatmul.mubr.msk.f32.gmra.mrb[4].mxu0 %vm180_vm0, %v177_v11 }
  0xea   : > { %v280_v13 = vpop.f32.mrb[0].mxu1  ;;  %v262_v14 = vpop.f32.mrb[0].mxu0 }
  0xeb   : > { %356 = vrot.lane.b32.xlu0 %v280_v13, %s559_s28  ;;  %v293_v15 = vrot.slane %v262_v14, 4  ;;  %v282_v16 = vpop.f32.mrb[1].mxu1  ;;  %v264_v17 = vpop.f32.mrb[1].mxu0  ;;  %v367_v28 = vrot.slane %v280_v13, 4 }
  0xec   : > { %358 = vrot.lane.b32.xlu1 %v282_v16, %s559_s28  ;;  %v294_v22 = vrot.slane %v264_v17, 4  ;;  %v368_v31 = vrot.slane %v282_v16, 4 }
  0xee   : > { %v268_v18 = vpop.f32.mrb[2].mxu0  ;;  %v286_v19 = vpop.f32.mrb[2].mxu1 }
  0xef   : > { %297 = vrot.lane.b32.xlu0 %v293_v15, %s560_s29  ;;  %v270_v20 = vpop.f32.mrb[3].mxu0  ;;  %v288_v21 = vpop.f32.mrb[3].mxu1  ;;  %v319_v24 = vrot.slane %v268_v18, 4 }
  0xf0   : > { %308 = vrot.lane.b32.xlu1 %v268_v18, %s561_s30  ;;  %v320_v26 = vrot.slane %v270_v20, 4 }
  0xf2   : > { %v274_v23 = vpop.f32.mrb[4].mxu0 }
  0xf3   : > { %299 = vrot.lane.b32.xlu0 %v294_v22, %s560_s29  ;;  %v276_v25 = vpop.f32.mrb[5].mxu0  ;;  %v343_v27 = vrot.slane %v274_v23, 4 }
  0xf4   : > { %310 = vrot.lane.b32.xlu1 %v270_v20, %s561_s30  ;;  %v344_v30 = vrot.slane %v276_v25, 4 }
  0xf7   : > { %323 = vrot.lane.b32.xlu0 %v319_v24, %s562_s4 }
  0xf8   : > { %325 = vrot.lane.b32.xlu1 %v320_v26, %s562_s4 }
  0xfb   : > { %332 = vrot.lane.b32.xlu0 %v274_v23, %s563_s5 }
  0xfc   : > { %334 = vrot.lane.b32.xlu1 %v276_v25, %s563_s5 }
  0xff   : > { %347 = vrot.lane.b32.xlu0 %v343_v27, %s564_s6 }
 0x100   : > { %371 = vrot.lane.b32.xlu1 %v367_v28, %s565_s7 }
 0x103   : > { %392 = vperm.xlu0 %540, %v389_v29  }
 0x104   : > { %349 = vrot.lane.b32.xlu1 %v344_v30, %s564_s6 }
 0x107   : > { %380 = vrot.lane.b32.xlu0 %v286_v19, %s566_s10 }
 0x108   : > { %373 = vrot.lane.b32.xlu1 %v368_v31, %s565_s7 }
 0x10c   : > { %382 = vrot.lane.b32.xlu1 %v288_v21, %s566_s10 }
 0x15d   : > { %v357_v32 = vpop.permute.xlu0 %356 }
 0x15e   : > { %v359_v33 = vpop.permute.xlu1 %358 }
 0x15f   : > { %v361_v4 = vsel %vm360_vm6, %v357_v32, %v359_v33  ;;  %v362_v5 = vsel %vm360_vm6, %v359_v33, %v357_v32 }
 0x161   : > { %v298_v34 = vpop.permute.xlu0 %297 }
 0x162   : > { %v309_v35 = vpop.permute.xlu1 %308 }
 0x165   : > { %v300_v38 = vpop.permute.xlu0 %299 }
 0x166   : > { %v311_v37 = vpop.permute.xlu1 %310  ;;  %v304_v43 = vsel %vm303_vm1, %v298_v34, %v300_v38  ;;  %v305_v44 = vsel %vm303_vm1, %v300_v38, %v298_v34 }
 0x167   : > { %v306_v45 = vadd.f32 %v304_v43, %v262_v14  ;;  %v307_v46 = vadd.f32 %v305_v44, %v264_v17  ;;  %v313_v48 = vsel %vm312_vm2, %v309_v35, %v311_v37  ;;  %v314_v49 = vsel %vm312_vm2, %v311_v37, %v309_v35 }
 0x169   : > { %v324_v41 = vpop.permute.xlu0 %323  ;;  %v315_v51 = vadd.f32 %v313_v48, %v306_v45  ;;  %v316_v52 = vadd.f32 %v314_v49, %v307_v46 }
 0x16a   : > { %v326_v40 = vpop.permute.xlu1 %325 }
 0x16b   : > { %v328_v53 = vsel %vm327_vm3, %v324_v41, %v326_v40  ;;  %v329_v54 = vsel %vm327_vm3, %v326_v40, %v324_v41 }
 0x16c   : > { %v330_v58 = vadd.f32 %v328_v53, %v315_v51  ;;  %v331_v59 = vadd.f32 %v329_v54, %v316_v52 }
 0x16d   : > { %v333_v50 = vpop.permute.xlu0 %332 }
 0x16e   : > { %v335_v42 = vpop.permute.xlu1 %334 }
 0x16f   : > { %v337_v56 = vsel %vm336_vm4, %v333_v50, %v335_v42  ;;  %v338_v57 = vsel %vm336_vm4, %v335_v42, %v333_v50 }
 0x170   : > { %v339_v63 = vadd.f32 %v337_v56, %v330_v58  ;;  %v340_v0 = vadd.f32 %v338_v57, %v331_v59 }
 0x171   : > { %v348_v60 = vpop.permute.xlu0 %347 }
 0x172   : > { %v372_v47 = vpop.permute.xlu1 %371 }
 0x176   : > { %v350_v55 = vpop.permute.xlu1 %349 }
 0x177   : > { %v352_v61 = vsel %vm351_vm5, %v348_v60, %v350_v55  ;;  %v353_v62 = vsel %vm351_vm5, %v350_v55, %v348_v60 }
 0x178   : > { %v354_v1 = vadd.f32 %v352_v61, %v339_v63  ;;  %v355_v2 = vadd.f32 %v353_v62, %v340_v0 }
 0x17a   : > { %v374_v3 = vpop.permute.xlu1 %373  ;;  %v363_v6 = vadd.f32 %v361_v4, %v354_v1  ;;  %v364_v7 = vadd.f32 %v362_v5, %v355_v2 }
 0x17b   : > { %v376_v9 = vsel %vm375_vm7, %v372_v47, %v374_v3  ;;  %v377_v10 = vsel %vm375_vm7, %v374_v3, %v372_v47 }
 0x17c   : > { %v378_v12 = vadd.f32 %v376_v9, %v363_v6  ;;  %v379_v13 = vadd.f32 %v377_v10, %v364_v7 }
 0x17e   : > { %v383_v11 = vpop.permute.xlu1 %382 }
 0x182   : > { %v393_v8 = vpop.permute.xlu0 %392 }
 0x186   : > { %v381_v14 = vpop.permute.xlu0 %380 }
 0x187   : > { %v385_v15 = vsel %vm384_vm8, %v381_v14, %v383_v11  ;;  %v386_v16 = vsel %vm384_vm8, %v383_v11, %v381_v14 }
 0x188   : > { %v387_v17 = vadd.f32 %v385_v15, %v378_v12  ;;  %v388_v18 = vadd.f32 %v386_v16, %v379_v13 }
 0x18a   : > { %v395_v19 = vadd.f32 %v393_v8, %v387_v17  ;;  %v396_v20 = vadd.f32 %v393_v8, %v388_v18 }
 0x18c   : > { %v398_v21 = vsel %vm397_vm9, %v395_v19, -inf  ;;  %v405_v22 = vsel %vm397_vm9, %v396_v20, -inf }
 0x18d   : > { %v399_v23 = vrot.slane %v398_v21, 4  ;;  %v406_v24 = vrot.slane %v405_v22, 4 }
 0x18f   : > { %v400_v25 = vmax.f32 %v398_v21, %v399_v23  ;;  %v407_v26 = vmax.f32 %v405_v22, %v406_v24 }
 0x191   : > { %v401_v27 = vrot.slane %v400_v25, 2  ;;  %v408_v28 = vrot.slane %v407_v26, 2 }
 0x193   : > { %v402_v29 = vmax.f32 %v400_v25, %v401_v27  ;;  %v409_v30 = vmax.f32 %v407_v26, %v408_v28 }
 0x195   : > { %v403_v31 = vrot.slane %v402_v29, 1  ;;  %v410_v32 = vrot.slane %v409_v30, 1 }
 0x197   : > { %v404_v33 = vmax.f32 %v402_v29, %v403_v31  ;;  %v411_v34 = vmax.f32 %v409_v30, %v410_v32 }
 0x199   : > { %v412_v35 = vsub.f32 %v395_v19, %v404_v33  ;;  %v413_v36 = vsub.f32 %v396_v20, %v411_v34 }
 0x19b   : > { %v414_v37 = vmul.f32 1.442695, %v412_v35  ;;  %v416_v38 = vmul.f32 1.442695, %v413_v36 }
 0x19d   : > { %541 = vpow2.f32 %v414_v37 }
 0x19e   : > { %543 = vpow2.f32 %v416_v38 }
 0x1a7   : > { %v542_v39 = vpop.eup %541 }
 0x1a8   : > { %v544_v40 = vpop.eup %543  ;;  %v418_v41 = vsel %vm397_vm9, %v542_v39, 0.0 }
 0x1a9   : > { %v419_v42 = vrot.slane %v418_v41, 4  ;;  %v425_v43 = vsel %vm397_vm9, %v544_v40, 0.0 }
 0x1aa   : > { %v426_v44 = vrot.slane %v425_v43, 4 }
 0x1ab   : > { %v420_v45 = vadd.f32 %v419_v42, %v418_v41 }
 0x1ac   : > { %v427_v46 = vadd.f32 %v426_v44, %v425_v43 }
 0x1ad   : > { %v421_v47 = vrot.slane %v420_v45, 2 }
 0x1ae   : > { %v428_v48 = vrot.slane %v427_v46, 2 }
 0x1af   : > { %v422_v49 = vadd.f32 %v421_v47, %v420_v45 }
 0x1b0   : > { %v429_v50 = vadd.f32 %v428_v48, %v427_v46 }
 0x1b1   : > { %v423_v51 = vrot.slane %v422_v49, 1 }
 0x1b2   : > { %v430_v52 = vrot.slane %v429_v50, 1 }
 0x1b3   : > { %v424_v53 = vadd.f32 %v423_v51, %v422_v49 }
 0x1b4   : > { %v431_v54 = vadd.f32 %v430_v52, %v429_v50 }
 0x1b5   : > { %545 = vlog2.f32 %v424_v53 }
 0x1b6   : > { %547 = vlog2.f32 %v431_v54 }
 0x1bf   : > { %v546_v55 = vpop.eup %545 }
 0x1c0   : > { %v548_v56 = vpop.eup %547  ;;  %v433_v57 = vmul.f32 0.6931472, %v546_v55 }
 0x1c1   : > { %v435_v58 = vmul.f32 0.6931472, %v548_v56 }
 0x1c2   : > { %v436_v59 = vsub.f32 %v412_v35, %v433_v57 }
 0x1c3   : > { %v437_v60 = vsub.f32 %v413_v36, %v435_v58 }
 0x1c5   : > { %v440_v61 = vcombine.low %v436_v59, %v437_v60 }
 0x1c7   : > { %442 = vst [vmem:[%s170_s16] sm:$0xff] %v440_v61 }
 0x1c8 PF: > { %s13_s12 = sadd.s32 1, %s555_s12  }
 0x1c9   : > { %p10_p4 = scmp.ge.s32.totalorder %s13_s12, 4  }
 0x1cb   :  { %12 = sbr.rel (!%p10_p4) target bundleno = 1 (0x1), region = 62 }

</bundles_post_ra>
